<compile_context>
chip_gen: v6e
topology: v6e:2x2x1
jax: 0.10.0
libtpu: 0.0.40
codegen_flags: <defaults>
</compile_context>

<pallas_src>
import functools

import jax
import jax.numpy as jnp
import numpy as np
from jax.experimental import pallas as pl
from jax.experimental.pallas import tpu as pltpu


def _round_up(x: int, m: int) -> int:
    return ((x + m - 1) // m) * m


def _moe_expert_kernel(counts_ref, remap_ref, rw_ref, x_ref, w13_ref, w2_ref,
                       out_ref, acc_ref, *, t_i: int):
    del remap_ref  # only used by the weight index_maps
    e = pl.program_id(1)
    it = pl.program_id(2)
    n_e = pl.num_programs(1)
    n_i = pl.num_programs(2)

    # Zero the f32 accumulator at the start of each token tile's (expert, I-tile) sweep.
    @pl.when((e == 0) & (it == 0))
    def _():
        acc_ref[...] = jnp.zeros_like(acc_ref)

    # Skip compute for experts with no routed tokens (weight DMA is skipped via the
    # remapped index_maps in the wrapper).
    @pl.when(counts_ref[e] > 0)
    def _():
        x = x_ref[...]                                                       # (tT, H) bf16
        # Fused up-projection [w1_tile | w3_tile]: one MXU matmul, f32 accumulation.
        h13 = jnp.dot(x, w13_ref[0, 0], preferred_element_type=jnp.float32)  # (tT, 2*tI)
        h1 = h13[:, :t_i]
        h3 = h13[:, t_i:]
        h = (h1 * jax.nn.sigmoid(h1)) * h3                                   # SwiGLU, f32
        # Apply per-token routing weight BEFORE the down-projection (per-row scalar):
        # mathematically identical, but the broadcast multiply is (tT, tI) not (tT, H),
        # and unrouted tokens (rw = 0) contribute exactly zero.
        hw = (rw_ref[0] * h).astype(w2_ref.dtype)                            # (tT, tI) bf16
        acc_ref[...] += jnp.dot(hw, w2_ref[0, 0],
                                preferred_element_type=jnp.float32)          # (tT, H) f32

    # Last expert / last I-tile: cast down and emit this token tile exactly once.
    @pl.when((e == n_e - 1) & (it == n_i - 1))
    def _():
        out_ref[...] = acc_ref[...].astype(out_ref.dtype)


def prepare_moe_weights(w1, w3, w2, *, i_tile: int = 256,
                        compute_dtype=jnp.bfloat16):
    """One-time (load-time) weight fusion/retiling.

    w1, w3: (E, H, I); w2: (E, I, H)  ->  w13: (E, nI, H, 2*tI), w2_t: (E, nI, tI, H).
    I is padded up to a multiple of tI (padded columns/rows contribute exactly zero).
    """
    E, H, I = w1.shape
    tI = min(i_tile, _round_up(I, 128))
    I_pad = _round_up(I, tI)
    if I_pad != I:
        w1 = jnp.pad(w1, ((0, 0), (0, 0), (0, I_pad - I)))
        w3 = jnp.pad(w3, ((0, 0), (0, 0), (0, I_pad - I)))
        w2 = jnp.pad(w2, ((0, 0), (0, I_pad - I), (0, 0)))
    nI = I_pad // tI
    w13 = jnp.concatenate(
        [w1.astype(compute_dtype).reshape(E, H, nI, tI),
         w3.astype(compute_dtype).reshape(E, H, nI, tI)], axis=-1)           # (E, H, nI, 2*tI)
    w13 = jnp.transpose(w13, (0, 2, 1, 3))                                   # (E, nI, H, 2*tI)
    w2_t = w2.astype(compute_dtype).reshape(E, nI, tI, H)                    # (E, nI, tI, H)
    return w13, w2_t, tI


@functools.partial(jax.jit, static_argnames=("top_k", "i_tile_size", "token_tile"))
def mixtral_moe(hidden_states, gate_w, w13, w2_t, *, top_k: int,
                i_tile_size: int, token_tile: int = 256):
    """hidden_states: (..., H); gate_w: (H, E); w13/w2_t from prepare_moe_weights."""
    orig_shape = hidden_states.shape
    H = orig_shape[-1]
    x = hidden_states.reshape(-1, H)
    T = x.shape[0]
    E, nI, _, _ = w13.shape
    tI = i_tile_size
    out_dtype = hidden_states.dtype

    # ---- routing: gate matmul + softmax + top-k + renormalize, plain XLA in f32 ----
    logits = jnp.dot(x.astype(jnp.float32), gate_w.astype(jnp.float32))      # (T, E)
    probs = jax.nn.softmax(logits, axis=-1)
    topv, topi = jax.lax.top_k(probs, top_k)
    topv = topv / jnp.sum(topv, axis=-1, keepdims=True)                      # renormalize=True

    routing = jnp.zeros((T, E), jnp.float32)
    routing = routing.at[jnp.arange(T)[:, None], topi].set(topv)             # dense (T, E)
    counts = jnp.zeros((E,), jnp.int32).at[topi.reshape(-1)].add(1)          # tokens / expert

    # Zero-count experts reuse the previously active expert's resident weight blocks:
    # remap[e] = last active expert index <= e (0 if none) -> no weight DMA for idle experts.
    cand = jnp.where(counts > 0, jnp.arange(E, dtype=jnp.int32),
                     jnp.full((E,), -1, jnp.int32))
    remap = jnp.maximum(jax.lax.cummax(cand, axis=0), 0).astype(jnp.int32)

    # ---- token tiling: pad T up to a multiple of the tile (never one giant tile) ----
    tT = min(token_tile, _round_up(T, 8))
    T_pad = _round_up(T, tT)
    nT = T_pad // tT

    cdt = w13.dtype
    x_c = x.astype(cdt)
    if T_pad != T:
        x_c = jnp.pad(x_c, ((0, T_pad - T), (0, 0)))
        routing = jnp.pad(routing, ((0, T_pad - T), (0, 0)))                 # rw = 0 for pads
    rw = jnp.transpose(routing)[:, :, None]                                  # (E, T_pad, 1)

    kernel = functools.partial(_moe_expert_kernel, t_i=tI)

    def _w_map(t, e, i, cnt, rmp):
        # Freeze the I-tile index for idle experts so the block index never changes
        # across their sweep -> the pipeline keeps the resident buffer (no DMA).
        ii = jnp.where(cnt[e] > 0, i, nI - 1)
        return (rmp[e], ii, 0, 0)

    out = pl.pallas_call(
        kernel,
        out_shape=jax.ShapeDtypeStruct((T_pad, H), out_dtype),
        grid_spec=pltpu.PrefetchScalarGridSpec(
            num_scalar_prefetch=2,                      # counts, remap -> SMEM
            grid=(nT, E, nI),
            in_specs=[
                pl.BlockSpec((1, tT, 1), lambda t, e, i, cnt, rmp: (e, t, 0)),  # routing col
                pl.BlockSpec((tT, H), lambda t, e, i, cnt, rmp: (t, 0)),        # x token tile
                pl.BlockSpec((1, 1, H, 2 * tI), _w_map),                        # fused w13
                pl.BlockSpec((1, 1, tI, H), _w_map),                            # w2 tile
            ],
            out_specs=pl.BlockSpec((tT, H), lambda t, e, i, cnt, rmp: (t, 0)),
            scratch_shapes=[pltpu.VMEM((tT, H), jnp.float32)],                  # f32 accumulator
        ),
        compiler_params=pltpu.CompilerParams(
            dimension_semantics=("parallel", "arbitrary", "arbitrary"),
            vmem_limit_bytes=48 * 1024 * 1024,          # fits v7x's 64 MiB physical VMEM
        ),
    )(counts, remap, rw, x_c, w13, w2_t)

    out = out[:T]
    # reduce_results=True is a tensor-parallel all-reduce; single-device -> no-op.
    return out.reshape(orig_shape).astype(out_dtype)


def mixtral_moe_ref(hidden_states, gate_w, w1, w3, w2, *, top_k: int):
    """Pure-JAX f32 reference of the same semantics (for verification)."""
    orig_shape = hidden_states.shape
    H = orig_shape[-1]
    x = hidden_states.reshape(-1, H).astype(jnp.float32)
    logits = x @ gate_w.astype(jnp.float32)
    probs = jax.nn.softmax(logits, axis=-1)
    topv, topi = jax.lax.top_k(probs, top_k)
    topv = topv / jnp.sum(topv, axis=-1, keepdims=True)
    out = jnp.zeros_like(x)
    for k in range(top_k):
        e_idx = topi[:, k]
        w_k = topv[:, k][:, None]
        h1 = jnp.einsum("th,thi->ti", x, w1[e_idx].astype(jnp.float32))
        h3 = jnp.einsum("th,thi->ti", x, w3[e_idx].astype(jnp.float32))
        h = jax.nn.silu(h1) * h3
        out = out + w_k * jnp.einsum("ti,tih->th", h, w2[e_idx].astype(jnp.float32))
    return out.reshape(orig_shape)


if __name__ == "__main__":
    # Small, lane-aligned, MoE-consistent shapes (H, I multiples of 128).
    batch, seq = 2, 16
    hidden_size = 128
    intermediate_size = 256
    num_experts = 8
    top_k = 2

    key = jax.random.PRNGKey(0)
    k_x, k_g, k_w1, k_w3, k_w2 = jax.random.split(key, 5)

    hidden_states = jax.random.normal(
        k_x, (batch, seq, hidden_size), jnp.float32).astype(jnp.bfloat16)
    gate_w = (0.05 * jax.random.normal(
        k_g, (hidden_size, num_experts), jnp.float32)).astype(jnp.bfloat16)
    w1 = (0.05 * jax.random.normal(
        k_w1, (num_experts, hidden_size, intermediate_size), jnp.float32)).astype(jnp.bfloat16)
    w3 = (0.05 * jax.random.normal(
        k_w3, (num_experts, hidden_size, intermediate_size), jnp.float32)).astype(jnp.bfloat16)
    w2 = (0.05 * jax.random.normal(
        k_w2, (num_experts, intermediate_size, hidden_size), jnp.float32)).astype(jnp.bfloat16)

    # One-time weight fusion (load-time, not per forward call).
    w13, w2_t, tI = prepare_moe_weights(w1, w3, w2, i_tile=256)
    w13 = jax.block_until_ready(w13)
    w2_t = jax.block_until_ready(w2_t)

    out = mixtral_moe(hidden_states, gate_w, w13, w2_t,
                      top_k=top_k, i_tile_size=tI, token_tile=256)
    out = jax.block_until_ready(out)

    ref = mixtral_moe_ref(hidden_states, gate_w, w1, w3, w2, top_k=top_k)
    np.testing.assert_allclose(np.asarray(out, dtype=np.float32),
                               np.asarray(ref, dtype=np.float32),
                               rtol=5e-2, atol=1e-2)

    print("KERNEL_OK")
</pallas_src>

<mosaic_0001>
module attributes {stable_mosaic.version = 11 : i64} {
  func.func private @main(%arg0: i32) attributes {dimension_semantics = [#tpu.dimension_semantics<core_parallel>], iteration_bounds = array<i64: 2>, tpu.core_type = #tpu.core_type<sc_scalar_subcore>, window_params = []} {
    return
  }
}

module attributes {stable_mosaic.version = 11 : i64} {
  func.func private @main(%arg0: i32) attributes {dimension_semantics = [#tpu.dimension_semantics<core_parallel>], iteration_bounds = array<i64: 2>, tpu.core_type = #tpu.core_type<sc_scalar_subcore>, window_params = []} {
    return
  }
}

module attributes {stable_mosaic.version = 11 : i64} {
  func.func @_moe_expert_kernel(%arg0: i32, %arg1: i32, %arg2: i32, %arg3: memref<8xi32, #tpu.memory_space<smem>>, %arg4: memref<8xi32, #tpu.memory_space<smem>>, %arg5: memref<1x32x1xf32, #tpu.memory_space<vmem>>, %arg6: memref<32x128xbf16, #tpu.memory_space<vmem>>, %arg7: memref<1x1x128x512xbf16, #tpu.memory_space<vmem>>, %arg8: memref<1x1x256x128xbf16, #tpu.memory_space<vmem>>, %arg9: memref<32x128xbf16, #tpu.memory_space<vmem>>, %arg10: memref<32x128xf32, #tpu.memory_space<vmem>>) attributes {dimension_semantics = [#tpu.dimension_semantics<parallel>, #tpu.dimension_semantics<arbitrary>, #tpu.dimension_semantics<arbitrary>], iteration_bounds = array<i64: 1, 8, 1>, scalar_prefetch = 2 : i64, scratch_operands = 1 : i64, tpu.core_type = #tpu.core_type<tc>, window_params = [{transform_indices = @transform_0, window_bounds = array<i64: 1, 32, 1>}, {transform_indices = @transform_1, window_bounds = array<i64: 32, 128>}, {transform_indices = @transform_2, window_bounds = array<i64: 1, 1, 128, 512>}, {transform_indices = @transform_3, window_bounds = array<i64: 1, 1, 256, 128>}, {transform_indices = @transform_4, window_bounds = array<i64: 32, 128>}]} {
    %c0_i32 = arith.constant 0 : i32
    %0 = arith.cmpi eq, %arg1, %c0_i32 : i32
    %c0_i32_0 = arith.constant 0 : i32
    %1 = arith.cmpi eq, %arg2, %c0_i32_0 : i32
    %2 = arith.andi %0, %1 : i1
    %3 = arith.extui %2 : i1 to i32
    %c0_i32_1 = arith.constant 0 : i32
    %4 = arith.cmpi ne, %3, %c0_i32_1 : i32
    scf.if %4 {
      %cst = arith.constant 0.000000e+00 : f32
      %15 = vector.broadcast %cst : f32 to vector<32x128xf32>
      %c0 = arith.constant 0 : index
      %c0_6 = arith.constant 0 : index
      %16 = vector.load %arg10[%c0, %c0_6] : memref<32x128xf32, #tpu.memory_space<vmem>>, vector<32x128xf32>
      tpu.vector_store %arg10[%c0, %c0_6], %15 {strides = array<i32>} : memref<32x128xf32, #tpu.memory_space<vmem>>, vector<32x128xf32>,
    } else {
    }
    %5 = arith.index_cast %arg1 : i32 to index
    %6 = memref.load %arg3[%5] : memref<8xi32, #tpu.memory_space<smem>>
    %c0_i32_2 = arith.constant 0 : i32
    %7 = arith.cmpi sgt, %6, %c0_i32_2 : i32
    %8 = arith.extui %7 : i1 to i32
    %c0_i32_3 = arith.constant 0 : i32
    %9 = arith.cmpi ne, %8, %c0_i32_3 : i32
    scf.if %9 {
      %c0 = arith.constant 0 : index
      %c0_6 = arith.constant 0 : index
      %15 = vector.load %arg6[%c0, %c0_6] : memref<32x128xbf16, #tpu.memory_space<vmem>>, vector<32x128xbf16>
      %c0_7 = arith.constant 0 : index
      %c0_8 = arith.constant 0 : index
      %c0_9 = arith.constant 0 : index
      %c0_10 = arith.constant 0 : index
      %16 = vector.load %arg7[%c0_7, %c0_8, %c0_9, %c0_10] : memref<1x1x128x512xbf16, #tpu.memory_space<vmem>>, vector<1x1x128x512xbf16>
      %17 = vector.shape_cast %16 : vector<1x1x128x512xbf16> to vector<128x512xbf16>
      %cst = arith.constant dense<0.000000e+00> : vector<32x512xf32>
      %18 = tpu.matmul %15, %17, %cst {dimension_numbers = #tpu.dot_dimension_numbers<[1], [0], [0], [1], [0, 0, 1, 1], [], []>} : vector<32x128xbf16>, vector<128x512xbf16>, vector<32x512xf32> -> vector<32x512xf32>
      %19 = vector.extract_strided_slice %18 {offsets = [0, 0], sizes = [32, 256], strides = [1, 1]} : vector<32x512xf32> to vector<32x256xf32>
      %20 = vector.extract_strided_slice %18 {offsets = [0, 256], sizes = [32, 256], strides = [1, 1]} : vector<32x512xf32> to vector<32x256xf32>
      %21 = arith.negf %19 : vector<32x256xf32>
      %22 = math.exp %21 : vector<32x256xf32>
      %cst_11 = arith.constant 1.000000e+00 : f32
      %23 = vector.broadcast %cst_11 : f32 to vector<32x256xf32>
      %24 = arith.addf %23, %22 : vector<32x256xf32>
      %25 = arith.divf %23, %24 : vector<32x256xf32>
      %26 = arith.mulf %19, %25 : vector<32x256xf32>
      %27 = arith.mulf %26, %20 : vector<32x256xf32>
      %c0_12 = arith.constant 0 : index
      %c0_13 = arith.constant 0 : index
      %c0_14 = arith.constant 0 : index
      %28 = vector.load %arg5[%c0_12, %c0_13, %c0_14] : memref<1x32x1xf32, #tpu.memory_space<vmem>>, vector<1x32x1xf32>
      %29 = vector.shape_cast %28 : vector<1x32x1xf32> to vector<32x1xf32>
      %30 = vector.broadcast %29 : vector<32x1xf32> to vector<32x256xf32>
      %31 = arith.mulf %30, %27 : vector<32x256xf32>
      %32 = arith.truncf %31 : vector<32x256xf32> to vector<32x256xbf16>
      %c0_15 = arith.constant 0 : index
      %c0_16 = arith.constant 0 : index
      %33 = vector.load %arg10[%c0_15, %c0_16] : memref<32x128xf32, #tpu.memory_space<vmem>>, vector<32x128xf32>
      %c0_17 = arith.constant 0 : index
      %c0_18 = arith.constant 0 : index
      %c0_19 = arith.constant 0 : index
      %c0_20 = arith.constant 0 : index
      %34 = vector.load %arg8[%c0_17, %c0_18, %c0_19, %c0_20] : memref<1x1x256x128xbf16, #tpu.memory_space<vmem>>, vector<1x1x256x128xbf16>
      %35 = vector.shape_cast %34 : vector<1x1x256x128xbf16> to vector<256x128xbf16>
      %cst_21 = arith.constant dense<0.000000e+00> : vector<32x128xf32>
      %36 = tpu.matmul %32, %35, %cst_21 {dimension_numbers = #tpu.dot_dimension_numbers<[1], [0], [0], [1], [0, 0, 1, 1], [], []>} : vector<32x256xbf16>, vector<256x128xbf16>, vector<32x128xf32> -> vector<32x128xf32>
      %37 = arith.addf %33, %36 : vector<32x128xf32>
      %c0_22 = arith.constant 0 : index
      %c0_23 = arith.constant 0 : index
      %38 = vector.load %arg10[%c0_22, %c0_23] : memref<32x128xf32, #tpu.memory_space<vmem>>, vector<32x128xf32>
      tpu.vector_store %arg10[%c0_22, %c0_23], %37 {strides = array<i32>} : memref<32x128xf32, #tpu.memory_space<vmem>>, vector<32x128xf32>,
    } else {
    }
    %c7_i32 = arith.constant 7 : i32
    %10 = arith.cmpi eq, %arg1, %c7_i32 : i32
    %c0_i32_4 = arith.constant 0 : i32
    %11 = arith.cmpi eq, %arg2, %c0_i32_4 : i32
    %12 = arith.andi %10, %11 : i1
    %13 = arith.extui %12 : i1 to i32
    %c0_i32_5 = arith.constant 0 : i32
    %14 = arith.cmpi ne, %13, %c0_i32_5 : i32
    scf.if %14 {
      %c0 = arith.constant 0 : index
      %c0_6 = arith.constant 0 : index
      %15 = vector.load %arg10[%c0, %c0_6] : memref<32x128xf32, #tpu.memory_space<vmem>>, vector<32x128xf32>
      %16 = arith.truncf %15 : vector<32x128xf32> to vector<32x128xbf16>
      %c0_7 = arith.constant 0 : index
      %c0_8 = arith.constant 0 : index
      %17 = vector.load %arg9[%c0_7, %c0_8] : memref<32x128xbf16, #tpu.memory_space<vmem>>, vector<32x128xbf16>
      tpu.vector_store %arg9[%c0_7, %c0_8], %16 {strides = array<i32>} : memref<32x128xbf16, #tpu.memory_space<vmem>>, vector<32x128xbf16>,
    } else {
    }
    return
  }
  func.func @transform_0(%arg0: i32, %arg1: i32, %arg2: i32, %arg3: memref<8xi32, #tpu.memory_space<smem>>, %arg4: memref<8xi32, #tpu.memory_space<smem>>) -> (i32, i32, i32) {
    %c0_i32 = arith.constant 0 : i32
    %c0_i32_0 = arith.constant 0 : i32
    return %arg1, %arg0, %c0_i32 : i32, i32, i32
  }
  func.func @transform_1(%arg0: i32, %arg1: i32, %arg2: i32, %arg3: memref<8xi32, #tpu.memory_space<smem>>, %arg4: memref<8xi32, #tpu.memory_space<smem>>) -> (i32, i32) {
    %c0_i32 = arith.constant 0 : i32
    %c0_i32_0 = arith.constant 0 : i32
    return %arg0, %c0_i32 : i32, i32
  }
  func.func @transform_2(%arg0: i32, %arg1: i32, %arg2: i32, %arg3: memref<8xi32, #tpu.memory_space<smem>>, %arg4: memref<8xi32, #tpu.memory_space<smem>>) -> (i32, i32, i32, i32) {
    %0 = arith.index_cast %arg1 : i32 to index
    %1 = memref.load %arg3[%0] : memref<8xi32, #tpu.memory_space<smem>>
    %c0_i32 = arith.constant 0 : i32
    %2 = arith.cmpi sgt, %1, %c0_i32 : i32
    %c0_i32_0 = arith.constant 0 : i32
    %3 = arith.select %2, %arg2, %c0_i32_0 : i32
    %4 = arith.index_cast %arg1 : i32 to index
    %5 = memref.load %arg4[%4] : memref<8xi32, #tpu.memory_space<smem>>
    %c0_i32_1 = arith.constant 0 : i32
    %c0_i32_2 = arith.constant 0 : i32
    %c0_i32_3 = arith.constant 0 : i32
    return %5, %3, %c0_i32_1, %c0_i32_2 : i32, i32, i32, i32
  }
  func.func @transform_3(%arg0: i32, %arg1: i32, %arg2: i32, %arg3: memref<8xi32, #tpu.memory_space<smem>>, %arg4: memref<8xi32, #tpu.memory_space<smem>>) -> (i32, i32, i32, i32) {
    %0 = arith.index_cast %arg1 : i32 to index
    %1 = memref.load %arg3[%0] : memref<8xi32, #tpu.memory_space<smem>>
    %c0_i32 = arith.constant 0 : i32
    %2 = arith.cmpi sgt, %1, %c0_i32 : i32
    %c0_i32_0 = arith.constant 0 : i32
    %3 = arith.select %2, %arg2, %c0_i32_0 : i32
    %4 = arith.index_cast %arg1 : i32 to index
    %5 = memref.load %arg4[%4] : memref<8xi32, #tpu.memory_space<smem>>
    %c0_i32_1 = arith.constant 0 : i32
    %c0_i32_2 = arith.constant 0 : i32
    %c0_i32_3 = arith.constant 0 : i32
    return %5, %3, %c0_i32_1, %c0_i32_2 : i32, i32, i32, i32
  }
  func.func @transform_4(%arg0: i32, %arg1: i32, %arg2: i32, %arg3: memref<8xi32, #tpu.memory_space<smem>>, %arg4: memref<8xi32, #tpu.memory_space<smem>>) -> (i32, i32) {
    %c0_i32 = arith.constant 0 : i32
    %c0_i32_0 = arith.constant 0 : i32
    return %arg0, %c0_i32 : i32, i32
  }
}

</mosaic_0001>

<bundles_post_ra>
// kernel: mixtral_moe.1
= control target key start
LH: loop header
LB: loop body
LE: loop exit
PB: predicated region body
PF: predicated region fallthrough
CT: control target
= control target key end

     0   :  { %s1707_s0 = inlined_call_operand.vmem [shape: s32[8], index: 0, kind: input, shape index: {}]   ;;  %s1708_s2 = inlined_call_operand.vmem [shape: f32[8,32,1], index: 2, kind: input, shape index: {}]   ;;  %s1709_s3 = inlined_call_operand.vmem [shape: bf16[32,128], index: 3, kind: input, shape index: {}]   ;;  %s1710_s4 = inlined_call_operand.vmem [shape: bf16[8,1,128,512], index: 4, kind: input, shape index: {}]   ;;  %s1711_s5 = inlined_call_operand.vmem [shape: bf16[8,1,256,128], index: 5, kind: input, shape index: {}]   ;;  %s1712_s6 = inlined_call_operand.hbm [shape: bf16[32,128], index: 6, kind: output, shape index: {}]   ;;  %s1713_s1 = inlined_call_operand.vmem [shape: s32[8], index: 1, kind: input, shape index: {}]  }
   0x1   :  { %s11_s23 = sshll.u32 %s1707_s0, 4  ;;  %s15_s26 = sshll.u32 %s1713_s1, 4  ;;  %s12_s23 = int_to_ptr.vmem [resolvable:$true] %s11_s23  ;;  %s16_s26 = int_to_ptr.vmem [resolvable:$true] %s15_s26 }
   0x2   :  { %s1440_s27 = scalar_lea.vmem %s12_s23, 16  ;;  %p1445_p1 = scmp.lt.s32.totalorder %s12_s23, %s12_s23 }
   0x3   :  { %p1441_p0 = scmp.ne.s32.totalorder %s12_s23, %s1440_s27  ;;  %p1446_p2 = scmp.lt.s32.totalorder %s1440_s27, %s1440_s27 }
   0x5   :  { %p1447_p3 = por %p1446_p2, %p1445_p1 }
   0x7   :  { %p1448_p4 = pnand %p1447_p3, %p1441_p0 }
   0x9   :  { %1451 = shalt.err (!%p1448_p4)  }
   0xa   :  { %s1518_s28 = smov [#allocation4]   ;;  %s1452_s29 = scalar_lea.vmem %s16_s26, 16 }
   0xb   :  { %14 = dma.vmem_to_smem %s12_s23, 16, %s1518_s28, [#allocation3] }
   0xc   :  { %p1453_p5 = scmp.ne.s32.totalorder %s16_s26, %s1452_s29  ;;  %p1457_p6 = scmp.lt.s32.totalorder %s16_s26, %s16_s26 }
   0xd   :  { %p1458_p7 = scmp.lt.s32.totalorder %s1452_s29, %s1452_s29 }
   0xf   :  { %p1459_p8 = por %p1458_p7, %p1457_p6 }
  0x11   :  { %p1460_p9 = pnand %p1459_p8, %p1453_p5 }
  0x13   :  { %1463 = shalt.err (!%p1460_p9)  }
  0x14   :  { %s1519_s0 = smov [#allocation5]  }
  0x15   :  { %18 = dma.vmem_to_smem %s16_s26, 16, %s1519_s0, [#allocation3] }
  0x16   :  { %1500 = dma.done.wait [#allocation3], 32 }
  0x17   :  { %1501 = vsyncadd [#allocation3], 4294967264 }
  0x18   :  { %20 = sfence }
  0x19   :  { %21 = vsyncpa [#allocation7], 0  ;;  %s1566_s1 = smov 0   ;;  %s1568_s30 = smov 0  }
  0x1a   :  { %s1570_s7 = smov 0  }
  0x1b LB: > { %s1159_s8 = sadd.s32 4294967295, %s1516_s7   ;;  %s42_s9 = sadd.s32 1, %s1512_s30  ;;  %s1516_s7 = sphi %s1570_s7, %s27_s7   ;;  %s1512_s30 = sphi %s1568_s30, %s1716_s30   ;;  %s1508_s1 = sphi %s1566_s1, %s1715_s1  }
  0x1c   : > { %p44_p10 = scmp.ge.s32.totalorder %s42_s9, 8  ;;  %p1163_p11 = scmp.ge.s32.totalorder %s1516_s7, 1 }
  0x1d   : > { %p276_p12 = scmp.lt.s32.totalorder %s1516_s7, 9 }
  0x1e   : > { %s1718_s9 = smov (%p44_p10, %s42_s9), 0 }
  0x1f   : > { %p277_p13 = pnand %p1163_p11, %p276_p12 }
  0x20   : > { %p333_p0 = scmp.lt.s32.totalorder (!%p277_p13), %s1508_s1, 7  ;;  %s351_s10 = sld [smem:[#allocation5 + %s1508_s1]] (!%p277_p13) }
  0x21   : > { %280 = sbr.rel (%p277_p13) target bundleno = 570 (0x23a), region = 36  ;;  %s368_s11 = sld [smem:[#allocation5 + %s1508_s1]] (!%p277_p13) }
  0x22   : > { %p384_p1 = scmp.eq.s32.totalorder (!%p277_p13), %s1508_s1, 0 }
  0x26   : > { %s334_s12 = scalar_select %p333_p0, %s1508_s1, 7  ;;  %v1520_v0 = vmov (%p384_p1), 0.0  }
  0x27   : > { %p352_p2 = scmp.lt.s32.totalorder %s351_s10, 7  ;;  %p369_p3 = scmp.lt.s32.totalorder %s368_s11, 7  ;;  %390 = vst [vmem:[#allocation2 + $0x10] sm:$0xff] (%p384_p1), %v1520_v0  ;;  %391 = vst [vmem:[#allocation2] sm:$0xff] (%p384_p1), %v1520_v0 }
  0x28   : > { %s1239_s13 = sshll.u32 %s334_s12, 5  ;;  %389 = sbr.rel (!%p384_p1) target bundleno = 45 (0x2d), region = 40  ;;  %392 = vst [vmem:[#allocation2 + $0x18] sm:$0xff] (%p384_p1), %v1520_v0  ;;  %393 = vst [vmem:[#allocation2 + $0x8] sm:$0xff] (%p384_p1), %v1520_v0 }
  0x29   : > { %s1595_s16 = scalar_lea.vmem %s1708_s2, %s1239_s13  ;;  %s1720_s10 = smov (!%p352_p2, %s351_s10), 7 }
  0x2a   : > { %s1722_s11 = smov (!%p369_p3, %s368_s11), 7  ;;  %s1240_s17 = sshll.u32 %s1720_s10, 8 }
  0x2b   : > { %s1600_s20 = scalar_lea.vmem %s1710_s4, %s1240_s17  ;;  %s1241_s21 = sshll.u32 %s1722_s11, 7 }
  0x2c   : > { %s1605_s24 = scalar_lea.vmem %s1711_s5, %s1241_s21 }
  0x2d PF: > { %s394_s25 = sld [smem:[#allocation4 + %s1508_s1]] }
  0x33   : > { %p1171_p4 = scmp.le.s32.totalorder %s394_s25, 0 }
  0x35   : > { %398 = sbr.rel (%p1171_p4) target bundleno = 544 (0x220), region = 44 }
  0x3a   : > { %v1342_v1 = vld [vmem:[%s1600_s20 + $0xe4] ss:$16 sps:$4 sm:$0xff]   ;;  %v1344_v2 = vld [vmem:[%s1600_s20 + $0xe0] ss:$16 sps:$4 sm:$0xff]   ;;  %v1521_v3 = vmov 0   ;;  %v778_v27 = vld [vmem:[%s1595_s16 + $0x8] sm:$0xff] }
  0x3b   : > { %639 = vmatprep.mubr.bf16.mxu0 %v1521_v3  ;;  %692 = vmatprep.mubr.bf16.mxu1 %v1521_v3  ;;  %v1345_v4 = vld [vmem:[%s1600_s20 + $0xc4] ss:$16 sps:$4 sm:$0xff]   ;;  %v1347_v5 = vld [vmem:[%s1600_s20 + $0xc0] ss:$16 sps:$4 sm:$0xff]   ;;  %v1365_v10 = vld [vmem:[%s1600_s20 + $0xec] ss:$16 sps:$4 sm:$0xff]  }
  0x3c   : > { %607 = vmatprep.subr.bf16.mxu0 %v1342_v1  ;;  %1340 = vset.pattern.permute.xlu0 %v1521_v3  ;;  %v1348_v6 = vld [vmem:[%s1600_s20 + $0xa4] ss:$16 sps:$4 sm:$0xff]   ;;  %v1350_v7 = vld [vmem:[%s1600_s20 + $0xa0] ss:$16 sps:$4 sm:$0xff]   ;;  %v1368_v11 = vld [vmem:[%s1600_s20 + $0xe8] ss:$16 sps:$4 sm:$0xff]  }
  0x3d   : > { %608 = vmatpush1.bf16.msra.mxu0 %v1344_v2  ;;  %1341 = vset.pattern.permute.xlu1 %v1521_v3  ;;  %v1351_v8 = vld [vmem:[%s1600_s20 + $0x84] ss:$16 sps:$4 sm:$0xff]   ;;  %v1353_v9 = vld [vmem:[%s1600_s20 + $0x80] ss:$16 sps:$4 sm:$0xff]   ;;  %v1370_v13 = vld [vmem:[%s1600_s20 + $0xcc] ss:$16 sps:$4 sm:$0xff]  }
  0x3e   : > { %609 = vmatprep.subr.bf16.mxu0 %v1345_v4  ;;  %v1354_v12 = vld [vmem:[%s1600_s20 + $0x64] ss:$16 sps:$4 sm:$0xff]   ;;  %660 = vmatprep.subr.bf16.mxu1 %v1365_v10  ;;  %v1372_v14 = vld [vmem:[%s1600_s20 + $0xc8] ss:$16 sps:$4 sm:$0xff]   ;;  %v1356_v15 = vld [vmem:[%s1600_s20 + $0x60] ss:$16 sps:$4 sm:$0xff]  }
  0x3f   : > { %661 = vmatpush1.bf16.msra.mxu1 %v1368_v11  ;;  %v1373_v16 = vld [vmem:[%s1600_s20 + $0xac] ss:$16 sps:$4 sm:$0xff]   ;;  %v1357_v17 = vld [vmem:[%s1600_s20 + $0x44] ss:$16 sps:$4 sm:$0xff]   ;;  %v1359_v18 = vld [vmem:[%s1600_s20 + $0x40] ss:$16 sps:$4 sm:$0xff]  }
  0x40   : > { %662 = vmatprep.subr.bf16.mxu1 %v1370_v13  ;;  %v1375_v19 = vld [vmem:[%s1600_s20 + $0xa8] ss:$16 sps:$4 sm:$0xff]   ;;  %v1377_v20 = vld [vmem:[%s1600_s20 + $0x8c] ss:$16 sps:$4 sm:$0xff]   ;;  %v1360_v21 = vld [vmem:[%s1600_s20 + $0x24] ss:$16 sps:$4 sm:$0xff]  }
  0x41   : > { %610 = vmatpush1.bf16.msra.mxu0 %v1347_v5  ;;  %v1362_v22 = vld [vmem:[%s1600_s20 + $0x20] ss:$16 sps:$4 sm:$0xff]   ;;  %v1363_v23 = vld [vmem:[%s1600_s20 + $0x4] ss:$16 sps:$4 sm:$0xff]   ;;  %v1379_v24 = vld [vmem:[%s1600_s20 + $0x88] ss:$16 sps:$4 sm:$0xff]  }
  0x42   : > { %611 = vmatprep.subr.bf16.mxu0 %v1348_v6  ;;  %v1380_v25 = vld [vmem:[%s1600_s20 + $0x6c] ss:$16 sps:$4 sm:$0xff]   ;;  %v777_v26 = vld [vmem:[%s1595_s16] sm:$0xff]  ;;  %v1382_v28 = vld [vmem:[%s1600_s20 + $0x68] ss:$16 sps:$4 sm:$0xff]  }
  0x43   : > { %663 = vmatpush1.bf16.msra.mxu1 %v1372_v14  ;;  %783 = vperm.xlu0 %1340, %v777_v26   ;;  %v779_v29 = vld [vmem:[%s1595_s16 + $0x10] sm:$0xff]  ;;  %v780_v30 = vld [vmem:[%s1595_s16 + $0x18] sm:$0xff]  ;;  %v1369_v33 = vld [vmem:[%s1709_s3] sm:$0xff]  }
  0x44   : > { %664 = vmatprep.subr.bf16.mxu1 %v1373_v16  ;;  %v1367_v31 = vld [vmem:[%s1600_s20] ss:$16 sps:$4 sm:$0xff]   ;;  %v1383_v32 = vld [vmem:[%s1600_s20 + $0x4c] ss:$16 sps:$4 sm:$0xff]   ;;  %793 = vperm.xlu1 %1341, %v779_v29   ;;  %v1385_v34 = vld [vmem:[%s1600_s20 + $0x48] ss:$16 sps:$4 sm:$0xff]  }
  0x45   : > { %612 = vmatpush1.bf16.msra.mxu0 %v1350_v7  ;;  %v1386_v35 = vld [vmem:[%s1600_s20 + $0x2c] ss:$16 sps:$4 sm:$0xff]   ;;  %v1388_v36 = vld [vmem:[%s1600_s20 + $0x28] ss:$16 sps:$4 sm:$0xff]   ;;  %v1394_v42 = vld [vmem:[%s1605_s24 + $0x70] sm:$0xff]  }
  0x46   : > { %613 = vmatprep.subr.bf16.mxu0 %v1351_v8  ;;  %v1389_v37 = vld [vmem:[%s1600_s20 + $0xc] ss:$16 sps:$4 sm:$0xff]   ;;  %v1391_v39 = vld [vmem:[%s1600_s20 + $0x8] ss:$16 sps:$4 sm:$0xff]   ;;  %v1395_v43 = vld [vmem:[%s1605_s24 + $0x30] sm:$0xff]  }
  0x47   : > { %665 = vmatpush1.bf16.msra.mxu1 %v1375_v19  ;;  %788 = vperm.xlu0 %1340, %v778_v27   ;;  %v1376_v38 = vld [vmem:[%s1709_s3 + $0x8] sm:$0xff]   ;;  %v1392_v40 = vld [vmem:[%s1605_s24 + $0x78] sm:$0xff]   ;;  %v1398_v46 = vld [vmem:[%s1605_s24 + $0x60] sm:$0xff]  }
  0x48   : > { %666 = vmatprep.subr.bf16.mxu1 %v1377_v20  ;;  %798 = vperm.xlu1 %1341, %v780_v30   ;;  %v1393_v41 = vld [vmem:[%s1605_s24 + $0x38] sm:$0xff]   ;;  %v1396_v44 = vld [vmem:[%s1605_s24 + $0x68] sm:$0xff]   ;;  %v1399_v47 = vld [vmem:[%s1605_s24 + $0x20] sm:$0xff]  }
  0x49   : > { %614 = vmatpush1.bf16.msra.mxu0 %v1353_v9  ;;  %v1397_v45 = vld [vmem:[%s1605_s24 + $0x28] sm:$0xff]   ;;  %v1400_v48 = vld [vmem:[%s1605_s24 + $0x58] sm:$0xff]   ;;  %v1402_v50 = vld [vmem:[%s1605_s24 + $0x50] sm:$0xff]  }
  0x4a   : > { %615 = vmatprep.subr.bf16.mxu0 %v1354_v12  ;;  %v1401_v49 = vld [vmem:[%s1605_s24 + $0x18] sm:$0xff]   ;;  %v1403_v51 = vld [vmem:[%s1605_s24 + $0x10] sm:$0xff]   ;;  %v1404_v52 = vld [vmem:[%s1605_s24 + $0x48] sm:$0xff]  }
  0x4b   : > { %667 = vmatpush1.bf16.msra.mxu1 %v1379_v24  ;;  %v1405_v53 = vld [vmem:[%s1605_s24 + $0x8] sm:$0xff]   ;;  %v1406_v54 = vld [vmem:[%s1605_s24 + $0x40] sm:$0xff]  }
  0x4c   : > { %668 = vmatprep.subr.bf16.mxu1 %v1380_v25  ;;  %v1407_v55 = vld [vmem:[%s1605_s24] sm:$0xff]  }
  0x4d   : > { %616 = vmatpush1.bf16.msra.mxu0 %v1356_v15 }
  0x4e   : > { %617 = vmatprep.subr.bf16.mxu0 %v1357_v17 }
  0x4f   : > { %669 = vmatpush1.bf16.msra.mxu1 %v1382_v28 }
  0x50   : > { %670 = vmatprep.subr.bf16.mxu1 %v1383_v32 }
  0x51   : > { %618 = vmatpush1.bf16.msra.mxu0 %v1359_v18 }
  0x52   : > { %619 = vmatprep.subr.bf16.mxu0 %v1360_v21 }
  0x53   : > { %671 = vmatpush1.bf16.msra.mxu1 %v1385_v34 }
  0x54   : > { %672 = vmatprep.subr.bf16.mxu1 %v1386_v35 }
  0x55   : > { %620 = vmatpush1.bf16.msra.mxu0 %v1362_v22 }
  0x56   : > { %621 = vmatprep.subr.bf16.mxu0 %v1363_v23 }
  0x57   : > { %673 = vmatpush1.bf16.msra.mxu1 %v1388_v36 }
  0x58   : > { %674 = vmatprep.subr.bf16.mxu1 %v1389_v37 }
  0x59   : > { %622 = vmatpush1.bf16.msra.mxu0 %v1367_v31 }
  0x5a   : > { %1259 = vmatprep.subr.bf16.mxu0 %v1392_v40 }
  0x5b   : > { %675 = vmatpush1.bf16.msra.mxu1 %v1391_v39 }
  0x5c   : > { %640 = vmatmul.mubr.bf16.vlgmr.msra.gmra.mxu0 %v1369_v33  ;;  %1287 = vmatprep.subr.bf16.mxu1 %v1392_v40 }
  0x5d   : > { %649 = vmatprep.mubr.bf16.mxu0 %v1521_v3  ;;  %1260 = vmatpush3.bf16.msra.mxu0 %v1393_v41 }
  0x5e   : > { %693 = vmatmul.mubr.bf16.vlgmr.msra.gmra.mxu1 %v1369_v33  ;;  %1261 = vmatprep.subr.bf16.mxu0 %v1394_v42 }
  0x5f   : > { %702 = vmatprep.mubr.bf16.mxu1 %v1521_v3  ;;  %1295 = vmatpush3.bf16.msra.mxu1 %v1393_v41 }
  0x60   : > { %1288 = vmatprep.subr.bf16.mxu1 %v1394_v42 }
  0x61   : > { %1262 = vmatpush3.bf16.msra.mxu0 %v1395_v43 }
  0x62   : > { %1263 = vmatprep.subr.bf16.mxu0 %v1396_v44 }
  0x63   : > { %1296 = vmatpush3.bf16.msra.mxu1 %v1395_v43 }
  0x64   : > { %650 = vmatmul.mubr.bf16.gmra.mxu0 %v1376_v38  ;;  %1289 = vmatprep.subr.bf16.mxu1 %v1396_v44 }
  0x65   : > { %1264 = vmatpush3.bf16.msra.mxu0 %v1397_v45 }
  0x66   : > { %703 = vmatmul.mubr.bf16.gmra.mxu1 %v1376_v38  ;;  %1265 = vmatprep.subr.bf16.mxu0 %v1398_v46 }
  0x67   : > { %1297 = vmatpush3.bf16.msra.mxu1 %v1397_v45 }
  0x68   : > { %1290 = vmatprep.subr.bf16.mxu1 %v1398_v46 }
  0x69   : > { %1266 = vmatpush3.bf16.msra.mxu0 %v1399_v47 }
  0x6a   : > { %1267 = vmatprep.subr.bf16.mxu0 %v1400_v48 }
  0x6b   : > { %1298 = vmatpush3.bf16.msra.mxu1 %v1399_v47 }
  0x6c   : > { %1291 = vmatprep.subr.bf16.mxu1 %v1400_v48 }
  0x6d   : > { %1268 = vmatpush3.bf16.msra.mxu0 %v1401_v49 }
  0x6e   : > { %1269 = vmatprep.subr.bf16.mxu0 %v1402_v50 }
  0x6f   : > { %1299 = vmatpush3.bf16.msra.mxu1 %v1401_v49 }
  0x70   : > { %1292 = vmatprep.subr.bf16.mxu1 %v1402_v50 }
  0x71   : > { %1270 = vmatpush3.bf16.msra.mxu0 %v1403_v51 }
  0x72   : > { %1271 = vmatprep.subr.bf16.mxu0 %v1404_v52 }
  0x73   : > { %1300 = vmatpush3.bf16.msra.mxu1 %v1403_v51 }
  0x74   : > { %1293 = vmatprep.subr.bf16.mxu1 %v1404_v52 }
  0x75   : > { %1272 = vmatpush3.bf16.msra.mxu0 %v1405_v53 }
  0x76   : > { %1273 = vmatprep.subr.bf16.mxu0 %v1406_v54 }
  0x77   : > { %1301 = vmatpush3.bf16.msra.mxu1 %v1405_v53 }
  0x78   : > { %1294 = vmatprep.subr.bf16.mxu1 %v1406_v54 }
  0x79   : > { %1274 = vmatpush3.bf16.msra.mxu0 %v1407_v55 }
  0x7b   : > { %1302 = vmatpush3.bf16.msra.mxu1 %v1407_v55 }
  0xbe   : > { %v784_v29 = vpop.permute.xlu0 %783 }
  0xbf   : > { %v794_v50 = vpop.permute.xlu1 %793 }
  0xc2   : > { %v789_v40 = vpop.permute.xlu0 %788 }
 0x11c   : > { %v641_v56 = vpop.f32.mrf.mxu0 }
 0x11d   : > { %v1206_v57 = vmul.f32 -1.442695, %v641_v56 }
 0x11e   : > { %v643_v58 = vpop.f32.mrf.mxu0  ;;  %v694_v13 = vpop.f32.mrf.mxu1 }
 0x11f   : > { %1408 = vpow2.f32 %v1206_v57  ;;  %v1207_v59 = vmul.f32 -1.442695, %v643_v58 }
 0x120   : > { %v645_v60 = vpop.f32.mrf.mxu0  ;;  %v696_v18 = vpop.f32.mrf.mxu1 }
 0x121   : > { %1410 = vpow2.f32 %v1207_v59  ;;  %v1208_v61 = vmul.f32 -1.442695, %v645_v60 }
 0x122   : > { %v647_v62 = vpop.f32.mrf.mxu0  ;;  %v698_v23 = vpop.f32.mrf.mxu1 }
 0x123   : > { %1412 = vpow2.f32 %v1208_v61  ;;  %v1209_v63 = vmul.f32 -1.442695, %v647_v62 }
 0x124   : > { %v1672_v0 = vpop.f32.mrf.mxu0  ;;  %v700_v27 = vpop.f32.mrf.mxu1 }
 0x125   : > { %1414 = vpow2.f32 %v1209_v63  ;;  %v1210_v1 = vmul.f32 -1.442695, %v1672_v0 }
 0x126   : > { %v653_v2 = vpop.f32.mrf.mxu0  ;;  %v704_v34 = vpop.f32.mrf.mxu1 }
 0x127   : > { %1416 = vpow2.f32 %v1210_v1  ;;  %v1211_v3 = vmul.f32 -1.442695, %v653_v2 }
 0x128   : > { %v655_v4 = vpop.f32.mrf.mxu0  ;;  %v706_v42 = vpop.f32.mrf.mxu1 }
 0x129   : > { %1418 = vpow2.f32 %v1211_v3  ;;  %v1212_v5 = vmul.f32 -1.442695, %v655_v4 }
 0x12a   : > { %v1675_v6 = vpop.f32.mrf.mxu0  ;;  %v708_v54 = vpop.f32.mrf.mxu1 }
 0x12b   : > { %1420 = vpow2.f32 %v1212_v5  ;;  %v1213_v7 = vmul.f32 -1.442695, %v1675_v6 }
 0x12c   : > { %v1409_v8 = vpop.eup %1408  ;;  %v710_v63 = vpop.f32.mrf.mxu1 }
 0x12d   : > { %v737_v9 = vadd.f32 1.0, %v1409_v8  ;;  %1422 = vpow2.f32 %v1213_v7 }
 0x12e   : > { %v1411_v10 = vpop.eup %1410 }
 0x12f   : > { %v738_v11 = vadd.f32 1.0, %v1411_v10  ;;  %1424 = vrcp.f32 %v737_v9  ;;  %v813_v10 = vld [vmem:[#allocation2 + $0x10] sm:$0xff] }
 0x130   : > { %v1413_v12 = vpop.eup %1412 }
 0x131   : > { %1426 = vrcp.f32 %v738_v11  ;;  %v739_v14 = vadd.f32 1.0, %v1413_v12 }
 0x132   : > { %v1415_v15 = vpop.eup %1414 }
 0x133   : > { %1428 = vrcp.f32 %v739_v14  ;;  %v740_v16 = vadd.f32 1.0, %v1415_v15  ;;  %v814_v14 = vld [vmem:[#allocation2] sm:$0xff] }
 0x134   : > { %v1417_v17 = vpop.eup %1416 }
 0x135   : > { %1430 = vrcp.f32 %v740_v16  ;;  %v741_v19 = vadd.f32 1.0, %v1417_v17 }
 0x136   : > { %v1419_v20 = vpop.eup %1418 }
 0x137   : > { %v742_v21 = vadd.f32 1.0, %v1419_v20  ;;  %1432 = vrcp.f32 %v741_v19  ;;  %v815_v19 = vld [vmem:[#allocation2 + $0x18] sm:$0xff] }
 0x138   : > { %v1421_v22 = vpop.eup %1420 }
 0x139   : > { %1434 = vrcp.f32 %v742_v21  ;;  %v743_v24 = vadd.f32 1.0, %v1421_v22 }
 0x13a   : > { %v1423_v25 = vpop.eup %1422 }
 0x13b   : > { %1436 = vrcp.f32 %v743_v24  ;;  %v744_v26 = vadd.f32 1.0, %v1423_v25  ;;  %v816_v24 = vld [vmem:[#allocation2 + $0x8] sm:$0xff] }
 0x13c   : > { %v1425_v28 = vpop.eup %1424 }
 0x13d   : > { %1438 = vrcp.f32 %v744_v26  ;;  %v761_v33 = vmul.f32 %v1425_v28, %v641_v56 }
 0x13e   : > { %v1427_v30 = vpop.eup %1426 }
 0x13f   : > { %v762_v31 = vmul.f32 %v1427_v30, %v643_v58  ;;  %v769_v41 = vmul.f32 %v761_v33, %v694_v13 }
 0x140   : > { %v1429_v32 = vpop.eup %1428 }
 0x141   : > { %v763_v35 = vmul.f32 %v1429_v32, %v645_v60  ;;  %v770_v38 = vmul.f32 %v762_v31, %v696_v18  ;;  %v801_v53 = vmul.f32 %v784_v29, %v769_v41 }
 0x142   : > { %v1431_v36 = vpop.eup %1430 }
 0x143   : > { %v764_v37 = vmul.f32 %v1431_v36, %v647_v62  ;;  %v771_v39 = vmul.f32 %v763_v35, %v698_v23  ;;  %v802_v48 = vmul.f32 %v784_v29, %v770_v38 }
 0x144   : > { %v1433_v43 = vpop.eup %1432 }
 0x145   : > { %v772_v44 = vmul.f32 %v764_v37, %v700_v27  ;;  %v803_v46 = vmul.f32 %v789_v40, %v771_v39  ;;  %v765_v52 = vmul.f32 %v1433_v43, %v1672_v0 }
 0x146   : > { %v1435_v45 = vpop.eup %1434 }
 0x147   : > { %v766_v47 = vmul.f32 %v1435_v45, %v653_v2  ;;  %v804_v49 = vmul.f32 %v789_v40, %v772_v44  ;;  %v809_v58 = vpack.c.bf16 %v803_v46, %v801_v53  ;;  %v773_v62 = vmul.f32 %v765_v52, %v704_v34  ;;  %v799_v2 = vpop.permute.xlu1 %798 }
 0x148   : > { %v1437_v51 = vpop.eup %1436 }
 0x149   : > { %v767_v55 = vmul.f32 %v1437_v51, %v655_v4  ;;  %v810_v56 = vpack.c.bf16 %v804_v49, %v802_v48  ;;  %v774_v60 = vmul.f32 %v766_v47, %v706_v42  ;;  %v805_v0 = vmul.f32 %v794_v50, %v773_v62 }
 0x14a   : > { %v1439_v57 = vpop.eup %1438 }
 0x14b   : > { %v768_v59 = vmul.f32 %v1439_v57, %v1675_v6  ;;  %v775_v61 = vmul.f32 %v767_v55, %v708_v54  ;;  %977 = vmatprep.mubr.bf16.mxu0 %v810_v56  ;;  %v806_v5 = vmul.f32 %v794_v50, %v774_v60 }
 0x14c   : > { %978 = vmatmul.mubr.bf16.vlgmr.msra.gmra.mxu0 %v809_v58 }
 0x14d   : > { %v776_v1 = vmul.f32 %v768_v59, %v710_v63  ;;  %v807_v3 = vmul.f32 %v799_v2, %v775_v61 }
 0x14f   : > { %v808_v7 = vmul.f32 %v799_v2, %v776_v1  ;;  %v811_v9 = vpack.c.bf16 %v807_v3, %v805_v0 }
 0x151   : > { %v812_v8 = vpack.c.bf16 %v808_v7, %v806_v5 }
 0x153   : > { %985 = vmatprep.mubr.bf16.mxu1 %v812_v8 }
 0x154   : > { %986 = vmatmul.mubr.bf16.vlgmr.msra.gmra.mxu1 %v811_v9 }
 0x20c   : > { %v1275_v4 = vpop.f32.mrf.mxu0 }
 0x20e   : > { %v1276_v11 = vpop.f32.mrf.mxu0 }
 0x20f   : > { %v1277_v6 = vadd.f32 %v1276_v11, %v1275_v4 }
 0x210   : > { %v1278_v12 = vpop.f32.mrf.mxu0 }
 0x211   : > { %v994_v13 = vadd.f32 %v1277_v6, %v813_v10 }
 0x212   : > { %v1279_v15 = vpop.f32.mrf.mxu0 }
 0x213   : > { %998 = vst [vmem:[#allocation2 + $0x10] sm:$0xff] %v994_v13  ;;  %v1280_v16 = vadd.f32 %v1279_v15, %v1278_v12 }
 0x214   : > { %v1281_v17 = vpop.f32.mrf.mxu1 }
 0x215   : > { %v995_v18 = vadd.f32 %v1280_v16, %v814_v14 }
 0x216   : > { %v1282_v20 = vpop.f32.mrf.mxu1 }
 0x217   : > { %999 = vst [vmem:[#allocation2] sm:$0xff] %v995_v18  ;;  %v1283_v21 = vadd.f32 %v1282_v20, %v1281_v17 }
 0x218   : > { %v1284_v22 = vpop.f32.mrf.mxu1 }
 0x219   : > { %v996_v23 = vadd.f32 %v1283_v21, %v815_v19 }
 0x21a   : > { %v1285_v25 = vpop.f32.mrf.mxu1 }
 0x21b   : > { %1000 = vst [vmem:[#allocation2 + $0x18] sm:$0xff] %v996_v23  ;;  %v1286_v26 = vadd.f32 %v1285_v25, %v1284_v22 }
 0x21d   : > { %v997_v27 = vadd.f32 %v1286_v26, %v816_v24 }
 0x21f   : > { %1001 = vst [vmem:[#allocation2 + $0x8] sm:$0xff] %v997_v27 }
 0x220 PF: > { %p1002_p5 = scmp.eq.s32.totalorder %s1508_s1, 7 }
 0x221   : > { %v1007_v28 = vld [vmem:[#allocation2 + $0x10] sm:$0xff] (%p1002_p5)  ;;  %v1008_v29 = vld [vmem:[#allocation2] sm:$0xff] (%p1002_p5) }
 0x222   : > { %1006 = sbr.rel (!%p1002_p5) target bundleno = 554 (0x22a), region = 48  ;;  %v1009_v30 = vld [vmem:[#allocation2 + $0x18] sm:$0xff] (%p1002_p5)  ;;  %v1251_v31 = vpack.c.bf16 (%p1002_p5), %v1008_v29, %v1007_v28 }
 0x224   : > { %1252 = vst [vmem:[#allocation6] sm:$0xff] (%p1002_p5), %v1251_v31  }
 0x226   : > { %v1010_v32 = vld [vmem:[#allocation2 + $0x8] sm:$0xff] (%p1002_p5) }
 0x227   : > { %v1256_v33 = vpack.c.bf16 %v1010_v32, %v1009_v30 }
 0x229   : > { %1258 = vst [vmem:[#allocation6 + $0x8] sm:$0xff] %v1256_v33  }
 0x22a PF: > { %p1683_p6 = scmp.eq.s32.totalorder %s1159_s8, 7  ;;  %s1522_s10 = smov [#allocation6]  }
 0x22b   : > { %s1040_s11 = sshll.u32 %s1522_s10, 4  ;;  %s1041_s11 = int_to_ptr.vmem [resolvable:$true] %s1040_s11 }
 0x22c   : > { %s1464_s1 = scalar_lea.vmem %s1041_s11, 256  ;;  %p1471_p10 = scmp.lt.s32.totalorder %s1041_s11, %s1041_s11 }
 0x22d   : > { %p1465_p7 = scmp.ne.s32.totalorder %s1041_s11, %s1464_s1  ;;  %p1472_p11 = scmp.lt.s32.totalorder %s1464_s1, %s1464_s1 }
 0x22f   : > { %p1466_p8 = pnand %p1465_p7, %p1683_p6  ;;  %p1473_p12 = por %p1472_p11, %p1471_p10 }
 0x231   : > { %p1467_p9 = pneg %p1466_p8 }
 0x233   : > { %p1474_p13 = pnand %p1473_p12, %p1467_p9 }
 0x235   : > { %1477 = shalt.err (!%p1474_p13)
}
 0x236   : > { %s1523_s12 = smov 64   ;;  %s1524_s8 = smov 4  }
 0x237   : > { %1304 = dma.vmem_to_hbm [thread:$0]  (%p1683_p6), %s1041_s11, 256, %s1712_s6, [#allocation7], %s1523_s12, %s1523_s12, %s1524_s8  }
 0x238   : > { %1503 = dma.done.wait (%p1683_p6), [#allocation7], 256  }
 0x239   : > { %1505 = vsyncadd (%p1683_p6), [#allocation7], 4294967040 }
 0x23a PF: > { %s27_s7 = sadd.s32 1, %s1516_s7   ;;  %s1715_s1 = smov %s1512_s30 }
 0x23b   : > { %p24_p0 = scmp.ge.s32.totalorder %s27_s7, 10   ;;  %s1716_s30 = smov %s1718_s9 }
 0x23d   :  { %26 = sbr.rel (!%p24_p0) target bundleno = 27 (0x1b), region = 85 }
 0x242   :  { %1056 = vsyncpa [#allocation7], 1 }
 0x243   :  { %1058 = vsyncpa [#allocation7 + $0x1], 1 }

</bundles_post_ra>
